<compile_context>
chip_gen: v5e
topology: v5e:2x2
jax: 0.10.0
libtpu: 0.0.40
codegen_flags: <defaults>
</compile_context>

<pallas_src>
import functools

import jax
import jax.numpy as jnp
from jax import lax
from jax.experimental import pallas as pl
from jax.experimental.pallas import tpu as pltpu


def _cell_kernel(i2s_ref, hs_ref, csp_ref, ws_ref, bs_ref, wc_ref, bc_ref,
                 ns_ref, h_ref, *, hidden, height):
    H, Ht = hidden, height
    hq = Ht // 4                       # heights packed per 4H-wide row

    # ---- state2state: Conv1d(H, 4H, k=2) over height as ONE K=2H MXU matmul --
    hs = hs_ref[...]                                            # (Ht, H)
    row = lax.broadcasted_iota(jnp.int32, (Ht, H), 0)
    hs_prev = jnp.where(row == 0, 0.0, pltpu.roll(hs, shift=1, axis=0))
    lhs_s = jnp.concatenate([hs_prev, hs], axis=-1)             # (Ht, 2H)
    s2s = (jnp.dot(lhs_s, ws_ref[...], preferred_element_type=jnp.float32)
           + bs_ref[...])                                       # (Ht, 4H)

    # ---- cell2cell: Conv1d(H, H, k=2), emitted directly in flat gate layout --
    # csp packs 4 consecutive heights per 4H-wide row; the block-diagonal RHS
    # (8H, 4H) makes one matmul compute the per-height conv in that layout.
    csp = csp_ref[...]                                          # (hq, 4H)
    lane = lax.broadcasted_iota(jnp.int32, (hq, 4 * H), 1)
    prow = lax.broadcasted_iota(jnp.int32, (hq, 4 * H), 0)
    lane_roll = pltpu.roll(csp, shift=H, axis=1)    # height t-1, lane blocks 1..3
    prev_row = pltpu.roll(lane_roll, shift=1, axis=0)  # height t-1, lane block 0
    cs_prev = jnp.where(lane < H, prev_row, lane_roll)
    cs_prev = jnp.where((lane < H) & (prow == 0), 0.0, cs_prev)    # zero pad row
    lhs_c = jnp.concatenate([cs_prev, csp], axis=-1)            # (hq, 8H)
    c2c = (jnp.dot(lhs_c, wc_ref[...], preferred_element_type=jnp.float32)
           + bc_ref[...])                                       # (hq, 4H)

    # ---- gates: vectorized, lane-dense; outputs written as whole slabs -------
    lstm = jax.nn.sigmoid(i2s_ref[...] + s2s)                   # (Ht, 4H)
    i_g = lstm[0 * hq:1 * hq, :]                                # (hq, 4H) each
    g_g = lstm[1 * hq:2 * hq, :]
    f_g = lstm[2 * hq:3 * hq, :]
    o_g = lstm[3 * hq:4 * hq, :]
    c = f_g * c2c + i_g * g_g
    h = o_g * jnp.tanh(c)
    ns_ref[...] = jnp.concatenate([c, h], axis=0)               # (2*hq, 4H) slab
    h_ref[...] = h                                              # (hq, 4H) slab


def pack_diagonal_lstm_params(params, hidden_size):
    """One-time (per layer) packing of the Conv1d weights for the kernel."""
    H = hidden_size
    w_s, b_s = params["s2s_w"], params["s2s_b"]      # (4H, H, 2), (4H,)
    w_c, b_c = params["c2c_w"], params["c2c_b"]      # (H, H, 2), (H,)

    # state2state: both taps stacked along K -> single (2H, 4H) matmul RHS.
    ws = jnp.concatenate([w_s[:, :, 0].T, w_s[:, :, 1].T], axis=0)      # (2H, 4H)
    bs = b_s.reshape(1, 4 * H)

    # cell2cell: 4-way block-diagonal per tap, taps stacked along K, so one
    # K=8H matmul on the packed cell state yields the flattened gate layout.
    def blkdiag4(x):                                 # (H, H) -> (4H, 4H)
        z = jnp.zeros((4 * H, 4 * H), x.dtype)
        for m in range(4):
            z = z.at[m * H:(m + 1) * H, m * H:(m + 1) * H].set(x)
        return z
    wc = jnp.concatenate([blkdiag4(w_c[:, :, 0].T), blkdiag4(w_c[:, :, 1].T)],
                         axis=0)                                        # (8H, 4H)
    bc = jnp.tile(b_c, 4).reshape(1, 4 * H)
    return {"ws": ws, "bs": bs, "wc": wc, "bc": bc}


def diagonal_lstm_cell(i2s, states, packed, hidden_size, height):
    B = i2s.shape[0]
    H, Ht = hidden_size, height
    nu = H * Ht
    hq = Ht // 4
    # TODO(synk): heights not divisible by 4 would need a fallback gate-split path.
    assert Ht % 4 == 0, "height must be divisible by 4"

    # glue: free row-major views of the flat state / input
    cs_p = states[:, :nu].reshape(B, hq, 4 * H)      # 4 heights packed per row
    hs = states[:, nu:].reshape(B, Ht, H)
    i2s_m = i2s.reshape(B, Ht, 4 * H)

    ns3, h3 = pl.pallas_call(
        functools.partial(_cell_kernel, hidden=H, height=Ht),
        grid=(B,),
        in_specs=[
            pl.BlockSpec((None, Ht, 4 * H), lambda b: (b, 0, 0)),   # i2s
            pl.BlockSpec((None, Ht, H), lambda b: (b, 0, 0)),       # hs
            pl.BlockSpec((None, hq, 4 * H), lambda b: (b, 0, 0)),   # packed cs
            pl.BlockSpec((2 * H, 4 * H), lambda b: (0, 0)),         # ws (resident)
            pl.BlockSpec((1, 4 * H), lambda b: (0, 0)),             # bs
            pl.BlockSpec((8 * H, 4 * H), lambda b: (0, 0)),         # wc (resident)
            pl.BlockSpec((1, 4 * H), lambda b: (0, 0)),             # bc
        ],
        out_specs=(
            pl.BlockSpec((None, 2 * hq, 4 * H), lambda b: (b, 0, 0)),  # [c; h]
            pl.BlockSpec((None, hq, 4 * H), lambda b: (b, 0, 0)),      # h
        ),
        out_shape=(jax.ShapeDtypeStruct((B, 2 * hq, 4 * H), jnp.float32),
                   jax.ShapeDtypeStruct((B, hq, 4 * H), jnp.float32)),
        compiler_params=pltpu.CompilerParams(
            dimension_semantics=("parallel",),        # v7x: shard batch over TCs
            vmem_limit_bytes=32 * 1024 * 1024),
    )(i2s_m, hs, cs_p, packed["ws"], packed["bs"], packed["wc"], packed["bc"])

    # glue: free row-major reshapes back to the module's flat layout
    return h3.reshape(B, nu), ns3.reshape(B, 2 * nu)


# ------------------------------ pure-JAX reference ----------------------------
def _reference(i2s, states, params, H, Ht):
    B = i2s.shape[0]
    nu = H * Ht
    cs = states[:, :nu].reshape(B, Ht, H)
    hs = states[:, nu:].reshape(B, Ht, H)
    pad = jnp.zeros((B, 1, H), jnp.float32)
    hs_p = jnp.concatenate([pad, hs], axis=1)
    cs_p = jnp.concatenate([pad, cs], axis=1)

    def conv(inp, w, b):  # Conv1d, kernel=2, over the height axis (channel-last)
        return (jnp.einsum("bti,oi->bto", inp[:, :-1, :], w[:, :, 0])
                + jnp.einsum("bti,oi->bto", inp[:, 1:, :], w[:, :, 1]) + b)

    s2s = conv(hs_p, params["s2s_w"], params["s2s_b"]).reshape(B, 4 * nu)
    c2c = conv(cs_p, params["c2c_w"], params["c2c_b"]).reshape(B, nu)
    lstm = jax.nn.sigmoid(i2s + s2s)
    i, g, f, o = jnp.split(lstm, 4, axis=1)
    c = f * c2c + i * g
    h = o * jnp.tanh(c)
    return h, jnp.concatenate([c, h], axis=1)


if __name__ == "__main__":
    hidden_size, height, batch = 32, 8, 2
    nu = hidden_size * height

    key = jax.random.PRNGKey(0)
    k1, k2, k3, k4, k5, k6 = jax.random.split(key, 6)
    bound = 1.0 / (hidden_size * 2) ** 0.5
    params = {
        "s2s_w": jax.random.uniform(k1, (4 * hidden_size, hidden_size, 2),
                                    jnp.float32, -bound, bound),
        "s2s_b": jax.random.uniform(k2, (4 * hidden_size,), jnp.float32, -bound, bound),
        "c2c_w": jax.random.uniform(k3, (hidden_size, hidden_size, 2),
                                    jnp.float32, -bound, bound),
        "c2c_b": jax.random.uniform(k4, (hidden_size,), jnp.float32, -bound, bound),
    }
    i2s = jax.random.normal(k5, (batch, 4 * nu), jnp.float32)
    states = jax.random.normal(k6, (batch, 2 * nu), jnp.float32)

    # Pack the conv weights ONCE per layer (not per step).
    packed = pack_diagonal_lstm_params(params, hidden_size)
    jax.block_until_ready(packed)

    h, new_states = diagonal_lstm_cell(i2s, states, packed, hidden_size, height)
    jax.block_until_ready((h, new_states))

    h_ref, ns_ref = _reference(i2s, states, params, hidden_size, height)
    assert h.shape == (batch, nu) and new_states.shape == (batch, 2 * nu)
    assert jnp.allclose(h, h_ref, atol=2e-3, rtol=2e-3)
    assert jnp.allclose(new_states, ns_ref, atol=2e-3, rtol=2e-3)

    print("KERNEL_OK")
</pallas_src>

<mosaic_0001>
module attributes {stable_mosaic.version = 11 : i64} {
  func.func @_cell_kernel(%arg0: i32, %arg1: memref<1x8x128xf32, #tpu.memory_space<vmem>>, %arg2: memref<1x8x32xf32, #tpu.memory_space<vmem>>, %arg3: memref<1x2x128xf32, #tpu.memory_space<vmem>>, %arg4: memref<64x128xf32, #tpu.memory_space<vmem>>, %arg5: memref<1x128xf32, #tpu.memory_space<vmem>>, %arg6: memref<256x128xf32, #tpu.memory_space<vmem>>, %arg7: memref<1x128xf32, #tpu.memory_space<vmem>>, %arg8: memref<1x4x128xf32, #tpu.memory_space<vmem>>, %arg9: memref<1x2x128xf32, #tpu.memory_space<vmem>>) attributes {dimension_semantics = [#tpu.dimension_semantics<parallel>], iteration_bounds = array<i64: 2>, scalar_prefetch = 0 : i64, scratch_operands = 0 : i64, tpu.core_type = #tpu.core_type<tc>, window_params = [{transform_indices = @transform_0, window_bounds = array<i64: 1, 8, 128>}, {transform_indices = @transform_1, window_bounds = array<i64: 1, 8, 32>}, {transform_indices = @transform_2, window_bounds = array<i64: 1, 2, 128>}, {pipeline_mode = #tpu.pipeline_mode<synchronous>, transform_indices = @transform_3, window_bounds = array<i64: 64, 128>}, {pipeline_mode = #tpu.pipeline_mode<synchronous>, transform_indices = @transform_4, window_bounds = array<i64: 1, 128>}, {pipeline_mode = #tpu.pipeline_mode<synchronous>, transform_indices = @transform_5, window_bounds = array<i64: 256, 128>}, {pipeline_mode = #tpu.pipeline_mode<synchronous>, transform_indices = @transform_6, window_bounds = array<i64: 1, 128>}, {transform_indices = @transform_7, window_bounds = array<i64: 1, 4, 128>}, {transform_indices = @transform_8, window_bounds = array<i64: 1, 2, 128>}]} {
    %c0 = arith.constant 0 : index
    %c0_0 = arith.constant 0 : index
    %c0_1 = arith.constant 0 : index
    %0 = vector.load %arg2[%c0, %c0_0, %c0_1] : memref<1x8x32xf32, #tpu.memory_space<vmem>>, vector<1x8x32xf32>
    %1 = vector.shape_cast %0 : vector<1x8x32xf32> to vector<8x32xf32>
    %2 = tpu.iota {dimensions = array<i32: 0>} : vector<8x32xi32>
    %c0_i32 = arith.constant 0 : i32
    %3 = vector.broadcast %c0_i32 : i32 to vector<8x32xi32>
    %4 = arith.cmpi eq, %2, %3 : vector<8x32xi32>
    %c1_i32 = arith.constant 1 : i32
    %5 = tpu.dynamic_rotate %1 by %c1_i32 dim 0 : vector<8x32xf32>, i32 -> vector<8x32xf32>
    %cst = arith.constant 0.000000e+00 : f32
    %6 = vector.broadcast %cst : f32 to vector<8x32xf32>
    %7 = arith.select %4, %6, %5 : vector<8x32xi1>, vector<8x32xf32>
    %8 = tpu.concatenate %7, %1 in 1 : vector<8x32xf32>, vector<8x32xf32> -> vector<8x64xf32>
    %c0_2 = arith.constant 0 : index
    %c0_3 = arith.constant 0 : index
    %9 = vector.load %arg4[%c0_2, %c0_3] : memref<64x128xf32, #tpu.memory_space<vmem>>, vector<64x128xf32>
    %cst_4 = arith.constant dense<0.000000e+00> : vector<8x128xf32>
    %10 = tpu.matmul %8, %9, %cst_4 {dimension_numbers = #tpu.dot_dimension_numbers<[1], [0], [0], [1], [0, 0, 1, 1], [], []>} : vector<8x64xf32>, vector<64x128xf32>, vector<8x128xf32> -> vector<8x128xf32>
    %c0_5 = arith.constant 0 : index
    %c0_6 = arith.constant 0 : index
    %11 = vector.load %arg5[%c0_5, %c0_6] : memref<1x128xf32, #tpu.memory_space<vmem>>, vector<1x128xf32>
    %12 = vector.broadcast %11 : vector<1x128xf32> to vector<8x128xf32>
    %13 = arith.addf %10, %12 : vector<8x128xf32>
    %c0_7 = arith.constant 0 : index
    %c0_8 = arith.constant 0 : index
    %c0_9 = arith.constant 0 : index
    %14 = vector.load %arg3[%c0_7, %c0_8, %c0_9] : memref<1x2x128xf32, #tpu.memory_space<vmem>>, vector<1x2x128xf32>
    %15 = vector.shape_cast %14 : vector<1x2x128xf32> to vector<2x128xf32>
    %16 = tpu.iota {dimensions = array<i32: 1>} : vector<2x128xi32>
    %17 = tpu.iota {dimensions = array<i32: 0>} : vector<2x128xi32>
    %c32_i32 = arith.constant 32 : i32
    %18 = tpu.dynamic_rotate %15 by %c32_i32 dim 1 : vector<2x128xf32>, i32 -> vector<2x128xf32>
    %c1_i32_10 = arith.constant 1 : i32
    %19 = tpu.dynamic_rotate %18 by %c1_i32_10 dim 0 : vector<2x128xf32>, i32 -> vector<2x128xf32>
    %c32_i32_11 = arith.constant 32 : i32
    %20 = vector.broadcast %c32_i32_11 : i32 to vector<2x128xi32>
    %21 = arith.cmpi slt, %16, %20 : vector<2x128xi32>
    %22 = arith.select %21, %19, %18 : vector<2x128xi1>, vector<2x128xf32>
    %c32_i32_12 = arith.constant 32 : i32
    %23 = vector.broadcast %c32_i32_12 : i32 to vector<2x128xi32>
    %24 = arith.cmpi slt, %16, %23 : vector<2x128xi32>
    %c0_i32_13 = arith.constant 0 : i32
    %25 = vector.broadcast %c0_i32_13 : i32 to vector<2x128xi32>
    %26 = arith.cmpi eq, %17, %25 : vector<2x128xi32>
    %27 = arith.andi %24, %26 : vector<2x128xi1>
    %cst_14 = arith.constant 0.000000e+00 : f32
    %28 = vector.broadcast %cst_14 : f32 to vector<2x128xf32>
    %29 = arith.select %27, %28, %22 : vector<2x128xi1>, vector<2x128xf32>
    %30 = tpu.concatenate %29, %15 in 1 : vector<2x128xf32>, vector<2x128xf32> -> vector<2x256xf32>
    %c0_15 = arith.constant 0 : index
    %c0_16 = arith.constant 0 : index
    %31 = vector.load %arg6[%c0_15, %c0_16] : memref<256x128xf32, #tpu.memory_space<vmem>>, vector<256x128xf32>
    %cst_17 = arith.constant dense<0.000000e+00> : vector<2x128xf32>
    %32 = tpu.matmul %30, %31, %cst_17 {dimension_numbers = #tpu.dot_dimension_numbers<[1], [0], [0], [1], [0, 0, 1, 1], [], []>} : vector<2x256xf32>, vector<256x128xf32>, vector<2x128xf32> -> vector<2x128xf32>
    %c0_18 = arith.constant 0 : index
    %c0_19 = arith.constant 0 : index
    %33 = vector.load %arg7[%c0_18, %c0_19] : memref<1x128xf32, #tpu.memory_space<vmem>>, vector<1x128xf32>
    %34 = vector.broadcast %33 : vector<1x128xf32> to vector<2x128xf32>
    %35 = arith.addf %32, %34 : vector<2x128xf32>
    %c0_20 = arith.constant 0 : index
    %c0_21 = arith.constant 0 : index
    %c0_22 = arith.constant 0 : index
    %36 = vector.load %arg1[%c0_20, %c0_21, %c0_22] : memref<1x8x128xf32, #tpu.memory_space<vmem>>, vector<1x8x128xf32>
    %37 = vector.shape_cast %36 : vector<1x8x128xf32> to vector<8x128xf32>
    %38 = arith.addf %37, %13 : vector<8x128xf32>
    %39 = arith.negf %38 : vector<8x128xf32>
    %40 = math.exp %39 : vector<8x128xf32>
    %cst_23 = arith.constant 1.000000e+00 : f32
    %41 = vector.broadcast %cst_23 : f32 to vector<8x128xf32>
    %42 = arith.addf %41, %40 : vector<8x128xf32>
    %43 = arith.divf %41, %42 : vector<8x128xf32>
    %44 = vector.extract_strided_slice %43 {offsets = [0, 0], sizes = [2, 128], strides = [1, 1]} : vector<8x128xf32> to vector<2x128xf32>
    %45 = vector.extract_strided_slice %43 {offsets = [2, 0], sizes = [2, 128], strides = [1, 1]} : vector<8x128xf32> to vector<2x128xf32>
    %46 = vector.extract_strided_slice %43 {offsets = [4, 0], sizes = [2, 128], strides = [1, 1]} : vector<8x128xf32> to vector<2x128xf32>
    %47 = vector.extract_strided_slice %43 {offsets = [6, 0], sizes = [2, 128], strides = [1, 1]} : vector<8x128xf32> to vector<2x128xf32>
    %48 = arith.mulf %46, %35 : vector<2x128xf32>
    %49 = arith.mulf %44, %45 : vector<2x128xf32>
    %50 = arith.addf %48, %49 : vector<2x128xf32>
    %51 = math.tanh %50 : vector<2x128xf32>
    %52 = arith.mulf %47, %51 : vector<2x128xf32>
    %53 = tpu.concatenate %50, %52 in 0 : vector<2x128xf32>, vector<2x128xf32> -> vector<4x128xf32>
    %c0_24 = arith.constant 0 : index
    %c0_25 = arith.constant 0 : index
    %c0_26 = arith.constant 0 : index
    %54 = vector.load %arg8[%c0_24, %c0_25, %c0_26] : memref<1x4x128xf32, #tpu.memory_space<vmem>>, vector<1x4x128xf32>
    %55 = vector.shape_cast %54 : vector<1x4x128xf32> to vector<4x128xf32>
    %56 = vector.shape_cast %53 : vector<4x128xf32> to vector<1x4x128xf32>
    tpu.vector_store %arg8[%c0_24, %c0_25, %c0_26], %56 {strides = array<i32>} : memref<1x4x128xf32, #tpu.memory_space<vmem>>, vector<1x4x128xf32>,
    %c0_27 = arith.constant 0 : index
    %c0_28 = arith.constant 0 : index
    %c0_29 = arith.constant 0 : index
    %57 = vector.load %arg9[%c0_27, %c0_28, %c0_29] : memref<1x2x128xf32, #tpu.memory_space<vmem>>, vector<1x2x128xf32>
    %58 = vector.shape_cast %57 : vector<1x2x128xf32> to vector<2x128xf32>
    %59 = vector.shape_cast %52 : vector<2x128xf32> to vector<1x2x128xf32>
    tpu.vector_store %arg9[%c0_27, %c0_28, %c0_29], %59 {strides = array<i32>} : memref<1x2x128xf32, #tpu.memory_space<vmem>>, vector<1x2x128xf32>,
    return
  }
  func.func @transform_0(%arg0: i32) -> (i32, i32, i32) {
    %c0_i32 = arith.constant 0 : i32
    %c0_i32_0 = arith.constant 0 : i32
    %c0_i32_1 = arith.constant 0 : i32
    return %arg0, %c0_i32, %c0_i32_0 : i32, i32, i32
  }
  func.func @transform_1(%arg0: i32) -> (i32, i32, i32) {
    %c0_i32 = arith.constant 0 : i32
    %c0_i32_0 = arith.constant 0 : i32
    %c0_i32_1 = arith.constant 0 : i32
    return %arg0, %c0_i32, %c0_i32_0 : i32, i32, i32
  }
  func.func @transform_2(%arg0: i32) -> (i32, i32, i32) {
    %c0_i32 = arith.constant 0 : i32
    %c0_i32_0 = arith.constant 0 : i32
    %c0_i32_1 = arith.constant 0 : i32
    return %arg0, %c0_i32, %c0_i32_0 : i32, i32, i32
  }
  func.func @transform_3(%arg0: i32) -> (i32, i32) {
    %c0_i32 = arith.constant 0 : i32
    %c0_i32_0 = arith.constant 0 : i32
    %c0_i32_1 = arith.constant 0 : i32
    return %c0_i32, %c0_i32_0 : i32, i32
  }
  func.func @transform_4(%arg0: i32) -> (i32, i32) {
    %c0_i32 = arith.constant 0 : i32
    %c0_i32_0 = arith.constant 0 : i32
    %c0_i32_1 = arith.constant 0 : i32
    return %c0_i32, %c0_i32_0 : i32, i32
  }
  func.func @transform_5(%arg0: i32) -> (i32, i32) {
    %c0_i32 = arith.constant 0 : i32
    %c0_i32_0 = arith.constant 0 : i32
    %c0_i32_1 = arith.constant 0 : i32
    return %c0_i32, %c0_i32_0 : i32, i32
  }
  func.func @transform_6(%arg0: i32) -> (i32, i32) {
    %c0_i32 = arith.constant 0 : i32
    %c0_i32_0 = arith.constant 0 : i32
    %c0_i32_1 = arith.constant 0 : i32
    return %c0_i32, %c0_i32_0 : i32, i32
  }
  func.func @transform_7(%arg0: i32) -> (i32, i32, i32) {
    %c0_i32 = arith.constant 0 : i32
    %c0_i32_0 = arith.constant 0 : i32
    %c0_i32_1 = arith.constant 0 : i32
    return %arg0, %c0_i32, %c0_i32_0 : i32, i32, i32
  }
  func.func @transform_8(%arg0: i32) -> (i32, i32, i32) {
    %c0_i32 = arith.constant 0 : i32
    %c0_i32_0 = arith.constant 0 : i32
    %c0_i32_1 = arith.constant 0 : i32
    return %arg0, %c0_i32, %c0_i32_0 : i32, i32, i32
  }
}

</mosaic_0001>

<bundles_post_ra>
// kernel: tpu_custom_call.1
= control target key start
LH: loop header
LB: loop body
LE: loop exit
PB: predicated region body
PF: predicated region fallthrough
CT: control target
= control target key end

     0   :  { %s1520_s0 = inlined_call_operand.hbm [shape: f32[2,8,128], index: 0, kind: input, shape index: {}]   ;;  %s1521_s1 = inlined_call_operand.hbm [shape: f32[2,8,32], index: 1, kind: input, shape index: {}]   ;;  %s1522_s2 = inlined_call_operand.hbm [shape: f32[2,2,128], index: 2, kind: input, shape index: {}]   ;;  %s1523_s3 = inlined_call_operand.hbm [shape: f32[64,128], index: 3, kind: input, shape index: {}]   ;;  %s1524_s4 = inlined_call_operand.vmem [shape: f32[1,128], index: 4, kind: input, shape index: {}]   ;;  %s1525_s5 = inlined_call_operand.hbm [shape: f32[256,128], index: 5, kind: input, shape index: {}]   ;;  %s1526_s6 = inlined_call_operand.vmem [shape: f32[1,128], index: 6, kind: input, shape index: {}]   ;;  %s1527_s7 = inlined_call_operand.hbm [shape: f32[2,4,128], index: 7, kind: output, shape index: {0}]   ;;  %s1528_s8 = inlined_call_operand.hbm [shape: f32[2,2,128], index: 8, kind: output, shape index: {1}]  }
   0x1   :  { %1540 = sst [smem:[#allocation25_spill]] %s1521_s1 }
   0x2   :  { %1541 = sst [smem:[#allocation26_spill]] %s1523_s3 }
   0x3   :  { %14 = vsyncpa [#allocation3], 0 }
   0x4   :  { %16 = vsyncpa [#allocation3 + $0x1], 0 }
   0x5   :  { %17 = vsyncpa [#allocation6], 0 }
   0x6   :  { %19 = vsyncpa [#allocation6 + $0x1], 0 }
   0x7   :  { %20 = vsyncpa [#allocation9], 0 }
   0x8   :  { %21 = vsyncpa [#allocation4], 0 }
   0x9   :  { %23 = vsyncpa [#allocation4 + $0x1], 0 }
   0xa   :  { %24 = vsyncpa [#allocation13], 0 }
   0xb   :  { %26 = vsyncpa [#allocation13 + $0x1], 0  ;;  %s1264_s27 = smov 0   ;;  %s1266_s28 = smov 0  }
   0xc   :  { %s1268_s29 = smov 0   ;;  %s1270_s30 = smov 0  }
   0xd LB: > { %1542 = sst [smem:[#allocation19_spill]] %s1200_s27  ;;  %s1288_s12 = sadd.s32 4294967295, %s1212_s30   ;;  %s1212_s30 = sphi %s1270_s30, %s1565_s30   ;;  %s1208_s29 = sphi %s1268_s29, %s1567_s29   ;;  %s1204_s28 = sphi %s1266_s28, %s1569_s28   ;;  %s1200_s27 = sphi %s1264_s27, %s1568_s27  }
   0xe   : > { %1543 = sst [smem:[#allocation20_spill]] %s1208_s29  ;;  %p835_p0 = scmp.ge.s32.totalorder %s1212_s30, 1 }
   0xf   : > { %s1544_s3 = sld [smem:[#allocation26_spill]]  ;;  %p1539_p1 = scmp.eq.s32.totalorder %s1288_s12, 0 }
  0x10   : > { %p251_p2 = scmp.lt.s32.totalorder %s1212_s30, 3  ;;  %s1214_s14 = smov [#allocation8]  }
  0x11   : > { %s264_s15 = sshll.u32 %s1214_s14, 4  ;;  %s1529_s17 = smov 128   ;;  %s265_s15 = int_to_ptr.vmem [resolvable:$true] %s264_s15 }
  0x12   : > { %p1293_p3 = pnand %p835_p0, %p251_p2  ;;  %s1530_s18 = smov 8  }
  0x13   : > { %s834_s19 = sadd.s32 4294967294, %s1212_s30   ;;  %s1313_s20 = sadd.s32 1, %s1212_s30  }
  0x14   : > { %p881_p4 = pneg %p1293_p3  ;;  %1547 = sst [smem:[#allocation21_spill]] %s1313_s20 }
  0x15   : > { %s262_s11 = sshll.u32 %s1544_s3, 4  ;;  %s39_s21 = sadd.s32 1, %s1208_s29  ;;  %s263_s11 = int_to_ptr.hbm [resolvable:$true] %s262_s11 }
  0x16   : > { %p1302_p6 = pnand %p881_p4, %p1539_p1  ;;  %s36_s22 = ssub.s32 %s1212_s30, %s1313_s20 }
  0x17   : > { %p46_p7 = scmp.ne.s32.totalorder %s1208_s29, %s1204_s28  ;;  %p37_p8 = scmp.eq.s32.totalorder %s36_s22, 0 }
  0x18   : > { %884 = dma.hbm_to_vmem [thread:$0]  (!%p1302_p6), %s263_s11, 1024, %s265_s15, [#allocation9], %s1529_s17, %s1529_s17, %s1530_s18  }
  0x19   : > { %p47_p9 = scmp.eq.s32.totalorder %s1212_s30, 0  ;;  %p52_p10 = scmp.ne.s32.totalorder %s1204_s28, %s1200_s27 }
  0x1a   : > { %p212_p11 = scmp.eq.s32.totalorder %s1288_s12, 1  ;;  %p218_p2 = scmp.eq.s32.totalorder %s834_s19, 1 }
  0x1b   : > { %s1325_s23 = scalar_select %p37_p8, %s1208_s29, %s39_s21  }
  0x1c   : > { %p48_p12 = por %p47_p9, %p46_p7  ;;  %p1329_p13 = por %p1539_p1, %p52_p10 }
  0x1d   : > { %1548 = sst [smem:[#allocation22_spill]] %s1325_s23  ;;  %p1333_p0 = por %p212_p11, %p46_p7 }
  0x1e   : > { %p907_p4 = scmp.lt.s32.totalorder %s1212_s30, 2  ;;  %s1339_s26 = sand.u32 1, %s1208_s29  }
  0x1f   : > { %s1550_s25 = scalar_select %p1333_p0, 1, 0 }
  0x20   : > { %p1341_p5 = por %p218_p2, %p52_p10  ;;  %s1538_s10 = sshll.u32 %s1339_s26, 3 }
  0x21   : > { %1551 = sst [smem:[#allocation23_spill]] %s1550_s25  ;;  %s840_s11 = sshll.u32 %s1212_s30, 3 }
  0x22   : > { %s1552_s9 = scalar_select %p1341_p5, 1, 0 }
  0x23   : > { %p1347_p8 = pnand %p907_p4, %p48_p12  ;;  %s317_s15 = sand.u32 1, %s1212_s30  }
  0x24   : > { %1553 = sst [smem:[#allocation24_spill]] %s1552_s9  ;;  %s321_s17 = scalar_lea.vmem [#allocation5], %s1538_s10 }
  0x25   : > { %s1555_s1 = sld [smem:[#allocation25_spill]]  ;;  %s329_s18 = sshll.u32 %s321_s17, 4  ;;  %s330_s18 = int_to_ptr.vmem [resolvable:$true] %s329_s18 }
  0x26   : > { %s279_s20 = sshll.u32 %s1525_s5, 4  ;;  %s1362_s9 = scalar_lea.sflag [#allocation6], %s317_s15  ;;  %s280_s20 = int_to_ptr.hbm [resolvable:$true] %s279_s20 }
  0x27   : > { %p990_p9 = pneg %p1347_p8 }
  0x2b   : > { %s325_s22 = scalar_lea.hbm %s1555_s1, %s840_s11  ;;  %s993_s21 = scalar_lea.hbm %s1555_s1, 16 }
  0x2c   : > { %s327_s3 = sshll.u32 %s325_s22, 4  ;;  %s328_s3 = int_to_ptr.hbm [resolvable:$true] %s327_s3 }
  0x2d   : > { %s986_s27 = sshra.s32 %s328_s3, 4  ;;  %s987_s27 = int_to_ptr.hbm [resolvable:$true] %s986_s27 }
  0x2e   : > { %s988_s25 = scalar_lea.hbm %s987_s27, 8  ;;  %p994_p12 = scmp.lt.s32.totalorder %s987_s27, %s1555_s1 }
  0x2f   : > { %p989_p7 = scmp.ne.s32.totalorder %s987_s27, %s988_s25  ;;  %p995_p2 = scmp.lt.s32.totalorder %s993_s21, %s988_s25 }
  0x31   : > { %p991_p10 = pnand %p990_p9, %p989_p7  ;;  %p996_p4 = por %p995_p2, %p994_p12 }
  0x33   : > { %p992_p11 = pneg %p991_p10 }
  0x35   : > { %p997_p1 = pnand %p996_p4, %p992_p11 }
  0x37   : > { %1000 = shalt.err (!%p997_p1)
}
  0x38   : > { %894 = dma.hbm_to_vmem [thread:$0]  (!%p1347_p8), %s328_s3, 128, %s330_s18, %s1362_s9  }
  0x39   : > { %s1217_s29 = smov [#allocation10]   ;;  %s1556_s27 = smov 8  }
  0x3a   : > { %s281_s23 = sshll.u32 %s1217_s29, 4  ;;  %s1557_s25 = smov 128   ;;  %s282_s23 = int_to_ptr.vmem [resolvable:$true] %s281_s23 }
  0x3b   : > { %887 = dma.hbm_to_vmem [thread:$0]  (!%p1302_p6), %s280_s20, 4096, %s282_s23, [#allocation9], %s1557_s25, %s1557_s25, %s1556_s27  }
  0x3c   : > { %s306_s17 = scalar_lea.hbm %s1520_s0, %s840_s11  ;;  %s1558_s19 = sshll.u32 %s1339_s26, 3 }
  0x3d   : > { %s302_s21 = scalar_lea.vmem [#allocation2], %s1558_s19  ;;  %s308_s1 = sshll.u32 %s306_s17, 4  ;;  %s309_s1 = int_to_ptr.hbm [resolvable:$true] %s308_s1 }
  0x3e   : > { %s310_s22 = sshll.u32 %s302_s21, 4  ;;  %s843_s3 = sshll.u32 %s1339_s26, 1  ;;  %s311_s22 = int_to_ptr.vmem [resolvable:$true] %s310_s22 }
  0x3f   : > { %s299_s18 = scalar_lea.sflag [#allocation3], %s1339_s26  ;;  %s1046_s29 = sshra.s32 %s309_s1, 4  ;;  %s1047_s29 = int_to_ptr.hbm [resolvable:$true] %s1046_s29 }
  0x40   : > { %s1048_s16 = scalar_lea.hbm %s1047_s29, 8  ;;  %s1053_s11 = scalar_lea.hbm %s1520_s0, 16 }
  0x41   : > { %p1049_p1 = scmp.ne.s32.totalorder %s1047_s29, %s1048_s16  ;;  %p1054_p10 = scmp.lt.s32.totalorder %s1047_s29, %s1520_s0 }
  0x42   : > { %p1055_p11 = scmp.lt.s32.totalorder %s1053_s11, %s1048_s16 }
  0x43   : > { %p1051_p6 = pnand %p1049_p1, %p990_p9 }
  0x44   : > { %p1056_p12 = por %p1055_p11, %p1054_p10 }
  0x45   : > { %p1052_p7 = pneg %p1051_p6 }
  0x47   : > { %p1057_p2 = pnand %p1056_p12, %p1052_p7 }
  0x49   : > { %1060 = shalt.err (!%p1057_p2)
}
  0x4a   : > { %891 = dma.hbm_to_vmem [thread:$0]  (!%p1347_p8), %s309_s1, 128, %s311_s22, %s299_s18  }
  0x4b   : > { %s844_s26 = sshll.u32 %s1212_s30, 1  ;;  %s340_s19 = scalar_lea.vmem [#allocation7], %s843_s3 }
  0x4c   : > { %s344_s17 = scalar_lea.hbm %s1522_s2, %s844_s26  ;;  %s348_s21 = sshll.u32 %s340_s19, 4  ;;  %s349_s21 = int_to_ptr.vmem [resolvable:$true] %s348_s21 }
  0x4d   : > { %s346_s20 = sshll.u32 %s344_s17, 4  ;;  %s1083_s22 = scalar_lea.hbm %s1522_s2, 4  ;;  %s347_s20 = int_to_ptr.hbm [resolvable:$true] %s346_s20 }
  0x4e   : > { %s1076_s29 = sshra.s32 %s347_s20, 4  ;;  %s1077_s29 = int_to_ptr.hbm [resolvable:$true] %s1076_s29 }
  0x4f   : > { %s1078_s16 = scalar_lea.hbm %s1077_s29, 2  ;;  %p1084_p7 = scmp.lt.s32.totalorder %s1077_s29, %s1522_s2 }
  0x50   : > { %p1079_p4 = scmp.ne.s32.totalorder %s1077_s29, %s1078_s16  ;;  %p1085_p10 = scmp.lt.s32.totalorder %s1083_s22, %s1078_s16 }
  0x52   : > { %p1081_p1 = pnand %p1079_p4, %p990_p9  ;;  %p1086_p11 = por %p1085_p10, %p1084_p7 }
  0x54   : > { %p1082_p6 = pneg %p1081_p1 }
  0x56   : > { %p1087_p12 = pnand %p1086_p11, %p1082_p6 }
  0x58   : > { %1090 = shalt.err (!%p1087_p12)
}
  0x59   : > { %897 = dma.hbm_to_vmem [thread:$0]  (!%p1347_p8), %s347_s20, 32, %s349_s21, %s1362_s9  }
  0x5a   : > { %357 = sbr.rel (%p1293_p3) target bundleno = 411 (0x19b), region = 48  ;;  %s1422_s3 = sand.u32 (!%p1293_p3), 1, %s1204_s28  }
  0x5b   : > { %s846_s27 = sshll.u32 (!%p1293_p3), %s1422_s3, 3  ;;  %s360_s25 = scalar_lea.sflag (!%p1293_p3), [#allocation3], %s1422_s3 }
  0x5c   : > { %s1426_s26 = scalar_lea.vmem (!%p1293_p3), [#allocation2], %s846_s27 }
  0x5f   : > { %1179 = dma.done.wait (%p1329_p13), %s360_s25, 128  }
  0x60   : > { %1181 = vsyncadd (%p1329_p13), %s360_s25, 4294967168  ;;  %s369_s9 = sand.u32 1, %s1288_s12   ;;  %s373_s14 = scalar_lea.vmem [#allocation5], %s846_s27 }
  0x61   : > { %s370_s13 = scalar_lea.sflag [#allocation6], %s369_s9 }
  0x62   : > { %1183 = dma.done.wait (%p1329_p13), %s370_s13, 160  }
  0x63   : > { %1185 = vsyncadd (%p1329_p13), %s370_s13, 4294967136  ;;  %s848_s10 = sshll.u32 %s1422_s3, 1  ;;  %p1559_p3 = scmp.eq.s32.totalorder %s1288_s12, 0 }
  0x64   : > { %s383_s15 = scalar_lea.vmem [#allocation7], %s848_s10 }
  0x65   : > { %1187 = dma.done.wait (%p1559_p3), [#allocation9], 5120   ;;  %p1560_p8 = pmov %p1559_p3 }
  0x66   : > { %v1444_v0 = vld [vmem:[%s373_s14] sm:$0xff]  ;;  %s1218_s17 = smov 32   ;;  %v458_v8 = vld [vmem:[#allocation8 + $0x20] sm:$0xff]  ;;  %v1447_v12 = vld [vmem:[%s383_s15] sm:$0x3]  ;;  %v443_v38 = vlaneseq  ;;  %vm452_vm1 = vcmask 261120  }
  0x67   : > { %1189 = vsyncadd (%p1560_p8), [#allocation9], 4294962176  ;;  %v461_v1 = vld [vmem:[#allocation8 + $0x38] sm:$0xff]  ;;  %449 = vrot.lane.b32.xlu0 %v1444_v0, %s1218_s17  ;;  %v460_v2 = vld [vmem:[#allocation8 + $0x30] sm:$0xff]  ;;  %v446_v44 = vrot.slane %v1444_v0, 7  ;;  %vm466_vm2 = vcmask 523264  }
  0x68   : > { %478 = vmatpush.msra.mxu0 %v461_v1  ;;  %v541_v3 = vld [vmem:[#allocation10 + $0xf8] sm:$0xff]  ;;  %v459_v4 = vld [vmem:[#allocation8 + $0x28] sm:$0xff]  ;;  %v540_v5 = vld [vmem:[#allocation10 + $0xf0] sm:$0xff]  ;;  %v444_v42 = vshrl.u32 %v443_v38, 7  ;;  %v492_v48 = vand.u32 127, %v443_v38  ;;  %vm495_vm3 = vcmask 1047554  }
  0x69   : > { %566 = vmatpush.msra.mxu2 %v541_v3  ;;  %v525_v6 = vld [vmem:[#allocation10 + $0x78] sm:$0xff]  ;;  %v539_v7 = vld [vmem:[#allocation10 + $0xe8] sm:$0xff]  ;;  %v524_v9 = vld [vmem:[#allocation10 + $0x70] sm:$0xff]  ;;  %s860_s29 = sshll.u32 %s1288_s12, 1  ;;  %s851_s16 = sshll.u32 %s1422_s3, 2  ;;  %vm630_vm11 = vcmask 1041408  }
  0x6a   : > { %479 = vmatpush.msra.mxu0 %v460_v2  ;;  %546 = vmatpush.msra.mxu1 %v525_v6  ;;  %v538_v10 = vld [vmem:[#allocation10 + $0xe0] sm:$0xff]  ;;  %v523_v11 = vld [vmem:[#allocation10 + $0x68] sm:$0xff]  ;;  %v457_v13 = vld [vmem:[#allocation8 + $0x18] sm:$0xff]  ;;  %vm445_vm0 = vcmp.eq.s32.totalorder %v444_v42, 0  ;;  %vm500_vm4 = vcmp.lt.s32.totalorder %v492_v48, 32  ;;  %s859_s23 = sshll.u32 %s1288_s12, 2  ;;  %s664_s18 = scalar_lea.hbm %s1528_s8, %s860_s29 }
  0x6b   : > { %567 = vmatpush.msra.mxu2 %v540_v5  ;;  %v537_v14 = vld [vmem:[#allocation10 + $0xd8] sm:$0xff]  ;;  %v456_v15 = vld [vmem:[#allocation8 + $0x10] sm:$0xff]  ;;  %v455_v16 = vld [vmem:[#allocation8 + $0x8] sm:$0xff]  ;;  %v447_v45 = vsel %vm445_vm0, 0.0, %v446_v44  ;;  %s650_s25 = scalar_lea.hbm %s1527_s7, %s859_s23  ;;  %s668_s13 = sshll.u32 %s664_s18, 4  ;;  %s669_s13 = int_to_ptr.hbm [resolvable:$true] %s668_s13 }
  0x6c   : > { %480 = vmatpush.msra.mxu0 %v459_v4  ;;  %547 = vmatpush.msra.mxu1 %v524_v9  ;;  %v454_v17 = vld [vmem:[#allocation8] sm:$0xff]  ;;  %v536_v19 = vld [vmem:[#allocation10 + $0xd0] sm:$0xff]  ;;  %v521_v20 = vld [vmem:[#allocation10 + $0x58] sm:$0xff]  ;;  %s434_s14 = scalar_lea.vmem [#allocation11], %s851_s16  ;;  %s654_s24 = sshll.u32 %s650_s25, 4  ;;  %s1474_s24 = int_to_ptr.hbm [resolvable:$true] %s654_s24 }
  0x6d   : > { %568 = vmatpush.msra.mxu2 %v539_v7  ;;  %v522_v18 = vld [vmem:[#allocation10 + $0x60] sm:$0xff]  ;;  %v535_v21 = vld [vmem:[#allocation10 + $0xc8] sm:$0xff]  ;;  %v520_v22 = vld [vmem:[#allocation10 + $0x50] sm:$0xff]  ;;  %s652_s15 = sshll.u32 %s434_s14, 4  ;;  %s640_s12 = scalar_lea.sflag [#allocation13], %s1422_s3  ;;  %s1472_s15 = int_to_ptr.vmem [resolvable:$true] %s652_s15 }
  0x6e   : > { %481 = vmatpush.msra.mxu0 %v458_v8  ;;  %548 = vmatpush.msra.mxu1 %v523_v11  ;;  %v534_v23 = vld [vmem:[#allocation10 + $0xc0] sm:$0xff]  ;;  %v519_v24 = vld [vmem:[#allocation10 + $0x48] sm:$0xff]  ;;  %v533_v25 = vld [vmem:[#allocation10 + $0xb8] sm:$0xff]  ;;  %s1126_s29 = scalar_lea.hbm %s1528_s8, 4 }
  0x6f   : > { %569 = vmatpush.msra.mxu2 %v538_v10  ;;  %493 = vrot.lane.b32.xlu0 %v1447_v12, %s1218_s17  ;;  %v518_v26 = vld [vmem:[#allocation10 + $0x40] sm:$0xff]  ;;  %v532_v27 = vld [vmem:[#allocation10 + $0xb0] sm:$0xff]  ;;  %v517_v28 = vld [vmem:[#allocation10 + $0x38] sm:$0xff] }
  0x70   : > { %482 = vmatpush.msra.mxu0 %v457_v13  ;;  %549 = vmatpush.msra.mxu1 %v522_v18  ;;  %v531_v29 = vld [vmem:[#allocation10 + $0xa8] sm:$0xff]  ;;  %v516_v30 = vld [vmem:[#allocation10 + $0x30] sm:$0xff]  ;;  %v530_v31 = vld [vmem:[#allocation10 + $0xa0] sm:$0xff] }
  0x71   : > { %570 = vmatpush.msra.mxu2 %v537_v14  ;;  %v515_v32 = vld [vmem:[#allocation10 + $0x28] sm:$0xff]  ;;  %v529_v33 = vld [vmem:[#allocation10 + $0x98] sm:$0xff]  ;;  %v514_v34 = vld [vmem:[#allocation10 + $0x20] sm:$0xff] }
  0x72   : > { %483 = vmatpush.msra.mxu0 %v456_v15  ;;  %550 = vmatpush.msra.mxu1 %v521_v20  ;;  %v528_v35 = vld [vmem:[#allocation10 + $0x90] sm:$0xff]  ;;  %v513_v36 = vld [vmem:[#allocation10 + $0x18] sm:$0xff]  ;;  %v527_v37 = vld [vmem:[#allocation10 + $0x88] sm:$0xff] }
  0x73   : > { %571 = vmatpush.msra.mxu2 %v536_v19  ;;  %v512_v39 = vld [vmem:[#allocation10 + $0x10] sm:$0xff]  ;;  %v526_v40 = vld [vmem:[#allocation10 + $0x80] sm:$0xff]  ;;  %v511_v41 = vld [vmem:[#allocation10 + $0x8] sm:$0xff] }
  0x74   : > { %484 = vmatpush.msra.mxu0 %v455_v16  ;;  %551 = vmatpush.msra.mxu1 %v520_v22  ;;  %v510_v43 = vld [vmem:[#allocation10] sm:$0xff]  ;;  %vm505_vm5 = vmand %vm500_vm4, %vm445_vm0  ;;  %v948_v57 = vld [vmem:[%s1524_s4] ss:$0 sm:$0xff] }
  0x75   : > { %572 = vmatpush.msra.mxu2 %v535_v21  ;;  %vm854_vm6 = vmneg %vm505_vm5  ;;  %v586_v59 = vld [vmem:[%s1426_s26] sm:$0xff]  ;;  %s441_s26 = scalar_lea.vmem [#allocation12], %s848_s10  ;;  %s1120_s10 = sshra.s32 %s669_s13, 4  ;;  %s1121_s10 = int_to_ptr.hbm [resolvable:$true] %s1120_s10 }
  0x76   : > { %485 = vmatpush.msra.mxu0 %v454_v17  ;;  %552 = vmatpush.msra.mxu1 %v519_v24  ;;  %v949_v1 = vld [vmem:[%s1526_s6] ss:$0 sm:$0xff]  ;;  %s666_s9 = sshll.u32 %s441_s26, 4  ;;  %s1122_s19 = scalar_lea.hbm %s1121_s10, 2  ;;  %s667_s9 = int_to_ptr.vmem [resolvable:$true] %s666_s9 }
  0x77   : > { %573 = vmatpush.msra.mxu2 %v534_v23  ;;  %p1123_p13 = scmp.ne.s32.totalorder %s1121_s10, %s1122_s19  ;;  %p1127_p4 = scmp.lt.s32.totalorder %s1121_s10, %s1528_s8 }
  0x78   : > { %553 = vmatpush.msra.mxu1 %v518_v26  ;;  %p1128_p1 = scmp.lt.s32.totalorder %s1126_s29, %s1122_s19 }
  0x79   : > { %574 = vmatpush.msra.mxu2 %v533_v25  ;;  %p1124_p9 = pnand %p1123_p13, %p1333_p0 }
  0x7a   : > { %554 = vmatpush.msra.mxu1 %v517_v28  ;;  %p1129_p6 = por %p1128_p1, %p1127_p4 }
  0x7b   : > { %575 = vmatpush.msra.mxu2 %v532_v27  ;;  %p1125_p2 = pneg %p1124_p9 }
  0x7c   : > { %555 = vmatpush.msra.mxu1 %v516_v30 }
  0x7d   : > { %576 = vmatpush.msra.mxu2 %v531_v29  ;;  %p1130_p7 = pnand %p1129_p6, %p1125_p2 }
  0x7e   : > { %556 = vmatpush.msra.mxu1 %v515_v32 }
  0x7f   : > { %577 = vmatpush.msra.mxu2 %v530_v31 }
  0x80   : > { %557 = vmatpush.msra.mxu1 %v514_v34 }
  0x81   : > { %578 = vmatpush.msra.mxu2 %v529_v33 }
  0x82   : > { %558 = vmatpush.msra.mxu1 %v513_v36 }
  0x83   : > { %579 = vmatpush.msra.mxu2 %v528_v35 }
  0x84   : > { %559 = vmatpush.msra.mxu1 %v512_v39 }
  0x85   : > { %580 = vmatpush.msra.mxu2 %v527_v37 }
  0x86   : > { %560 = vmatpush.msra.mxu1 %v511_v41 }
  0x87   : > { %581 = vmatpush.msra.mxu2 %v526_v40 }
  0x88   : > { %582 = vmatmul.f32.vlgmr.msra.gmra.mxu2 %v1447_v12  ;;  %561 = vmatpush.msra.mxu1 %v510_v43 }
  0xd9   : > { %v450_v46 = vpop.permute.xlu0 %449 }
  0xda   : > { %v453_v47 = vsel %vm452_vm1, %v447_v45, %v450_v46 }
  0xdb   : > { %853 = vmatmul.msk.f32.vlgmr.msra.gmra.mxu0 %vm466_vm2, %v453_v47 }
  0xe1   : > { %v494_v49 = vpop.permute.xlu0 %493 }
  0xe2   : > { %v496_v50 = vrot.slane %v494_v49, 6  ;;  %v502_v52 = vrot.slane %v494_v49, 7 }
  0xe4   : > { %v497_v51 = vsel %vm495_vm3, %v496_v50, %v494_v49 }
  0xe5   : > { %v498_v53 = vrot.slane %v497_v51, 6 }
  0xe7   : > { %v499_v54 = vsel %vm495_vm3, %v498_v53, %v494_v49 }
  0xe8   : > { %v504_v55 = vsel %vm500_vm4, %v499_v54, %v502_v52 }
  0xe9   : > { %v507_v56 = vrot.slane %v504_v55, 1 }
  0xeb   : > { %855 = vmatmul.msk.f32.vlgmr.msra.gmra.mxu1 %vm854_vm6, %v507_v56 }
 0x10b   : > { %v583_v7 = vpop.f32.mrf.mxu2 }
 0x158   : > { %v487_v58 = vpop.f32.mrf.mxu0 }
 0x159   : > { %v488_v60 = vadd.f32 %v948_v57, %v487_v58 }
 0x15b   : > { %v587_v61 = vadd.f32 %v586_v59, %v488_v60 }
 0x15d   : > { %v856_v62 = vmul.f32 -1.442695, %v587_v61 }
 0x15f   : > { %950 = vpow2.f32 %v856_v62 }
 0x165   : > { %v951_v63 = vpop.eup %950 }
 0x166   : > { %v591_v0 = vadd.f32 1.0, %v951_v63 }
 0x168   : > { %952 = vrcp.f32 %v591_v0  ;;  %v563_v3 = vpop.f32.mrf.mxu1  ;;  %v603_v8 = vand.u32 2147483648, %v591_v0  ;;  %v601_v10 = vand.u32 2147483647, %v591_v0  ;;  %vm597_vm8 = vweird.f32 %v591_v0 }
 0x169   : > { %v564_v5 = vadd.f32 %v949_v1, %v563_v3 }
 0x16a   : > { %v604_v13 = vor.u32 1.1754944e-38, %v603_v8  ;;  %vm602_vm10 = vcmp.eq.f32.partialorder %v601_v10, 8.507059e+37 }
 0x16b   : > { %v584_v11 = vadd.f32 %v583_v7, %v564_v5 }
 0x16d   : > { %v608_v16 = vrot.slane %v584_v11, 4 }
 0x16e   : > { %v953_v2 = vpop.eup %952 }
 0x16f   : > { %v593_v4 = vmul.f32 %v953_v2, %v591_v0  ;;  %vm598_vm7 = vweird.f32 %v953_v2 }
 0x170   : > { %vm599_vm9 = vmor %vm597_vm8, %vm598_vm7 }
 0x171   : > { %v594_v6 = vsub.f32 1.0, %v593_v4 }
 0x173   : > { %v595_v9 = vmul.f32 %v953_v2, %v594_v6 }
 0x175   : > { %v596_v12 = vadd.f32 %v953_v2, %v595_v9 }
 0x177   : > { %v600_v14 = vsel %vm599_vm9, %v953_v2, %v596_v12 }
 0x178   : > { %v605_v15 = vsel %vm602_vm10, %v604_v13, %v600_v14 }
 0x179   : > { %v612_v17 = vrot.slane %v605_v15, 2  ;;  %v610_v19 = vmul.f32 %v608_v16, %v605_v15 }
 0x17b   : > { %v614_v18 = vmul.f32 %v612_v17, %v605_v15 }
 0x17d   : > { %v616_v20 = vrot.slane %v614_v18, 4 }
 0x17f   : > { %v618_v21 = vadd.f32 %v616_v20, %v610_v19 }
 0x181   : > { %954 = vtanh.f32 %v618_v21  ;;  %v625_v25 = vrot.slane %v618_v21, 4 }
 0x187   : > { %v955_v22 = vpop.eup %954 }
 0x188   : > { %v621_v23 = vrot.slane %v955_v22, 6 }
 0x18a   : > { %v623_v24 = vmul.f32 %v621_v23, %v605_v15 }
 0x18c   : > { %v628_v26 = vrot.slane %v623_v24, 4  ;;  %633 = vst [vmem:[%s441_s26 - $0x6] sm:$0xc0] %v623_v24 }
 0x18d   : > { %1133 = shalt.err (!%p1130_p7)
}
 0x18e   : > { %878 = dma.vmem_to_hbm [thread:$0]  (%p1333_p0), %s667_s9, 32, %s669_s13, %s640_s12   ;;  %v631_v27 = vsel %vm630_vm11, %v625_v25, %v628_v26 }
 0x18f   : > { %632 = vst [vmem:[%s434_s14] sm:$0xf] %v631_v27  ;;  %s635_s1 = scalar_lea.sflag [#allocation4], %s1422_s3  ;;  %s1148_s22 = sshra.s32 %s1474_s24, 4  ;;  %s1149_s22 = int_to_ptr.hbm [resolvable:$true] %s1148_s22 }
 0x190   : > { %s1150_s18 = scalar_lea.hbm %s1149_s22, 4  ;;  %s1154_s25 = scalar_lea.hbm %s1527_s7, 8 }
 0x191   : > { %p1151_p10 = scmp.ne.s32.totalorder %s1149_s22, %s1150_s18  ;;  %p1155_p3 = scmp.lt.s32.totalorder %s1149_s22, %s1527_s7 }
 0x192   : > { %p1156_p8 = scmp.lt.s32.totalorder %s1154_s25, %s1150_s18 }
 0x193   : > { %p1152_p11 = pnand %p1151_p10, %p1333_p0 }
 0x194   : > { %p1157_p13 = por %p1156_p8, %p1155_p3 }
 0x195   : > { %p1153_p12 = pneg %p1152_p11 }
 0x197   : > { %p1158_p9 = pnand %p1157_p13, %p1153_p12 }
 0x199   : > { %1161 = shalt.err (!%p1158_p9)
}
 0x19a   : > { %877 = dma.vmem_to_hbm [thread:$0]  (%p1333_p0), %s1472_s15, 64, %s1474_s24, %s635_s1  }
 0x19b PF: > { %s1562_s3 = sld [smem:[#allocation19_spill]]  ;;  %p1564_p2 = scmp.ge.s32.totalorder %s1212_s30, 2 }
 0x19d   : > { %p899_p4 = pnand %p1564_p2, %p1341_p5 }
 0x19f   : > { %p900_p1 = pneg %p899_p4 }
 0x1a1   : > { %s680_s13 = sand.u32 1, %s1562_s3  }
 0x1a2   : > { %s681_s14 = scalar_lea.sflag [#allocation4], %s680_s13 }
 0x1a3   : > { %1191 = dma.done.wait (%p900_p1), %s681_s14, 64  }
 0x1a4   : > { %1193 = vsyncadd (%p900_p1), %s681_s14, 4294967232  ;;  %s691_s12 = scalar_lea.sflag [#allocation13], %s680_s13 }
 0x1a5   : > { %1195 = dma.done.wait (%p900_p1), %s691_s12, 32  }
 0x1a6   : > { %1197 = vsyncadd (%p900_p1), %s691_s12, 4294967264  ;;  %s1565_s30 = sld [smem:[#allocation21_spill]]  ;;  %s1568_s27 = smov %s1204_s28 }
 0x1a7   : > { %s1566_s17 = sld [smem:[#allocation20_spill]] }
 0x1a8   : > { %s1567_s29 = sld [smem:[#allocation22_spill]] }
 0x1ac   : > { %p29_p0 = scmp.ge.s32.totalorder %s1565_s30, 4  }
 0x1ad   : > { %s1569_s28 = smov %s1566_s17 }
 0x1ae   :  { %31 = sbr.rel (!%p29_p0) target bundleno = 13 (0xd), region = 142 }
 0x1b3   :  { %697 = vsyncpa [#allocation3], 1 }
 0x1b4   :  { %699 = vsyncpa [#allocation3 + $0x1], 1 }
 0x1b5   :  { %700 = vsyncpa [#allocation6], 1 }
 0x1b6   :  { %702 = vsyncpa [#allocation6 + $0x1], 1 }
 0x1b7   :  { %703 = vsyncpa [#allocation9], 1 }
 0x1b8   :  { %704 = vsyncpa [#allocation4], 1 }
 0x1b9   :  { %706 = vsyncpa [#allocation4 + $0x1], 1 }
 0x1ba   :  { %707 = vsyncpa [#allocation13], 1 }
 0x1bb   :  { %709 = vsyncpa [#allocation13 + $0x1], 1 }

</bundles_post_ra>
